<compile_context>
chip_gen: v7x
topology: tpu7x:2x2x1
jax: 0.10.0
libtpu: 0.0.40
codegen_flags: <defaults>
</compile_context>

<pallas_src>
import functools

import jax
import jax.numpy as jnp
from jax.experimental import pallas as pl
from jax.experimental.pallas import tpu as pltpu


def _pairwise_max_fold(h):
    """(R, C) -> (8, C) elementwise max, R % 8 == 0, log-depth pairwise tree.

    Same op count as a serial chain but ~log2(R/8) dependence depth, so the
    4 VALU slots stay busy instead of serializing on vmax latency.
    """
    n_slabs = h.shape[0] // 8
    slabs = [h[i * 8:(i + 1) * 8, :] for i in range(n_slabs)]
    while len(slabs) > 1:
        nxt = [jnp.maximum(slabs[i], slabs[i + 1])
               for i in range(0, len(slabs) - 1, 2)]
        if len(slabs) % 2:
            nxt.append(slabs[-1])
        slabs = nxt
    return slabs[0]


def _pointnet_kernel(x_ref, w1_ref, b1_ref, w2_ref, b2_ref, w3_ref, b3_ref,
                     o_ref, acc_ref, *, n_valid, ragged):
    """One grid step: one batch element, one conv3 channel block, one point tile.

    x_ref  : (1, TN, 3)   f32  VMEM
    w1_ref : (3, 64)      f32
    b1_ref : (1, 64)      f32
    w2_ref : (64, 128)    bf16
    b2_ref : (1, 128)     f32
    w3_ref : (128, CT)    bf16  (this output-channel block)
    b3_ref : (1, CT)      f32
    o_ref  : (1, 1, CT)   f32   (written once, at the last point tile)
    acc_ref: (8, CT)      f32   VMEM scratch, running max over point tiles
    n_valid: static int   number of valid point rows in the (padded) array
    ragged : static bool  whether the last point tile extends past n_valid
    """
    n_idx = pl.program_id(2)

    @pl.when(n_idx == 0)
    def _():
        acc_ref[...] = jnp.full(acc_ref.shape, -jnp.inf, acc_ref.dtype)

    x = x_ref[0]          # (TN, 3) f32
    w1 = w1_ref[...]      # (3, 64) f32

    # conv1 (K=3) on the VPU: three broadcast FMAs, no MXU push / relayout.
    h1 = (x[:, 0:1] * w1[0:1, :]
          + x[:, 1:2] * w1[1:2, :]
          + x[:, 2:3] * w1[2:3, :]
          + b1_ref[...])
    h1 = jnp.maximum(h1, 0.0)                                    # (TN, 64) f32

    # conv2 + ReLU: MXU with bf16 operands, f32 accumulation.
    h2 = jnp.dot(h1.astype(jnp.bfloat16), w2_ref[...],
                 preferred_element_type=jnp.float32)
    h2 = jnp.maximum(h2 + b2_ref[...], 0.0)                      # (TN, 128) f32

    # conv3 (this channel block), no ReLU; bias b3 is hoisted to the epilogue.
    h3 = jnp.dot(h2.astype(jnp.bfloat16), w3_ref[...],
                 preferred_element_type=jnp.float32)             # (TN, CT) f32

    if ragged:
        # Rows past n_valid in the last (partial) tile hold unspecified data;
        # mask them to -inf so they never influence the max (jnp.where is a
        # select, so even NaN garbage cannot leak through).
        tn = h3.shape[0]
        row = jax.lax.broadcasted_iota(jnp.int32, (tn, 1), 0)
        valid = (n_idx * tn + row) < n_valid
        h3 = jnp.where(valid, h3, -jnp.inf)

    # Fold this point tile into the running max: log-depth, sublane-aligned,
    # pure-VPU maxima; the cross-sublane reduce is deferred to the epilogue.
    acc_ref[...] = jnp.maximum(acc_ref[...], _pairwise_max_fold(h3))

    # Epilogue: single cross-sublane reduce + hoisted b3 add + lane-dense store.
    @pl.when(n_idx == pl.num_programs(2) - 1)
    def _():
        pooled = jnp.max(acc_ref[...], axis=0, keepdims=True)     # (1, CT)
        o_ref[0] = pooled + b3_ref[...]


def _round_up(v, m):
    return (v + m - 1) // m * m


@functools.partial(jax.jit, static_argnames=("tile_n", "c_tile"))
def pointnet_feat(x, w1, b1, w2, b2, w3, b3, *, tile_n=None, c_tile=None):
    """x: (B, N, 3) float32  ->  global feature (B, 1024) float32."""
    B, N, C = x.shape
    assert C == 3, "PointNetfeat.conv1 expects 3 input channels"
    C_OUT = w3.shape[1]                       # 1024

    # Sublane-align N (<= 7 extra rows) by replicating point 0 (max-invariant).
    # Ragged tiles beyond this are handled in-kernel by masking, not padding.
    n8 = _round_up(N, 8)
    if n8 != N:
        x = jnp.concatenate(
            [x, jnp.broadcast_to(x[:, :1, :], (B, n8 - N, 3))], axis=1)

    if tile_n is None:
        # Large point tile: amortizes the ~0.35 us/step pipeline overhead.
        # (1024 keeps f32 temporaries ~<12 MiB; 2048 is also safe if desired.)
        tile_n = min(1024, n8)
    assert tile_n % 8 == 0, "point tile must be sublane aligned (multiple of 8)"
    assert tile_n <= n8

    if c_tile is None:
        # Single-TC chips (v5e/v6e): never split channels.  On v7x the batch
        # axis feeds the second TensorCore; split channels only when B == 1.
        c_tile = 512 if B == 1 else 1024
    c_tile = min(c_tile, C_OUT)
    assert C_OUT % c_tile == 0 and c_tile % 128 == 0

    n_tiles = pl.cdiv(n8, tile_n)
    ragged = (n8 % tile_n) != 0

    kernel = functools.partial(_pointnet_kernel, n_valid=n8, ragged=ragged)

    grid = (B, C_OUT // c_tile, n_tiles)

    out = pl.pallas_call(
        kernel,
        out_shape=jax.ShapeDtypeStruct((B, 1, C_OUT), jnp.float32),
        grid_spec=pltpu.PrefetchScalarGridSpec(
            num_scalar_prefetch=0,
            grid=grid,
            in_specs=[
                pl.BlockSpec((1, tile_n, 3), lambda b, c, n: (b, n, 0)),
                pl.BlockSpec((3, 64), lambda b, c, n: (0, 0)),
                pl.BlockSpec((1, 64), lambda b, c, n: (0, 0)),
                pl.BlockSpec((64, 128), lambda b, c, n: (0, 0)),
                pl.BlockSpec((1, 128), lambda b, c, n: (0, 0)),
                pl.BlockSpec((128, c_tile), lambda b, c, n: (0, c)),
                pl.BlockSpec((1, c_tile), lambda b, c, n: (0, c)),
            ],
            out_specs=pl.BlockSpec((1, 1, c_tile), lambda b, c, n: (b, 0, c)),
            scratch_shapes=[pltpu.VMEM((8, c_tile), jnp.float32)],
        ),
        compiler_params=pltpu.CompilerParams(
            dimension_semantics=("parallel", "parallel", "arbitrary"),
            # Well above actual use (~12 MiB at defaults), safe on v7x.
            vmem_limit_bytes=32 * 1024 * 1024,
        ),
    )(x, w1, b1, w2.astype(jnp.bfloat16), b2, w3.astype(jnp.bfloat16), b3)

    return out.reshape(B, C_OUT)


def _init_params(key):
    """Deterministic parameter init matching the torch layer shapes.

    torch Conv1d(Cin, Cout, 1) weight has shape (Cout, Cin, 1); we keep the
    mathematically equivalent transposed (Cin, Cout) matrices for matmul, plus
    (1, Cout) biases.  Init mimics torch's default uniform(-1/sqrt(fan_in), .).
    """
    ks = jax.random.split(key, 6)

    def u(k, shape, fan_in):
        bound = 1.0 / jnp.sqrt(fan_in)
        return jax.random.uniform(k, shape, jnp.float32, -bound, bound)

    w1 = u(ks[0], (3, 64), 3.0)
    b1 = u(ks[1], (1, 64), 3.0)
    w2 = u(ks[2], (64, 128), 64.0)
    b2 = u(ks[3], (1, 128), 64.0)
    w3 = u(ks[4], (128, 1024), 128.0)
    b3 = u(ks[5], (1, 1024), 128.0)
    return w1, b1, w2, b2, w3, b3


def _reference(x, w1, b1, w2, b2, w3, b3):
    """Pure-JAX reference of the same forward pass (bf16 MXU operands, f32 acc,
    b3 hoisted past the max) for a tight sanity check."""
    h1 = jax.nn.relu(jnp.einsum("bnc,cd->bnd", x, w1) + b1)
    h2 = jnp.einsum("bnc,cd->bnd", h1.astype(jnp.bfloat16),
                    w2.astype(jnp.bfloat16),
                    preferred_element_type=jnp.float32)
    h2 = jax.nn.relu(h2 + b2)
    h3 = jnp.einsum("bnc,cd->bnd", h2.astype(jnp.bfloat16),
                    w3.astype(jnp.bfloat16),
                    preferred_element_type=jnp.float32)
    return jnp.max(h3, axis=1) + b3


if __name__ == "__main__":
    key = jax.random.PRNGKey(0)
    pkey, xkey1, xkey2 = jax.random.split(key, 3)

    w1, b1, w2, b2, w3, b3 = _init_params(pkey)
    # Pre-cast the MXU weight operands to bf16 once, outside the jitted call.
    w2 = w2.astype(jnp.bfloat16)
    w3 = w3.astype(jnp.bfloat16)

    # Test 1: small batch, N=20 points (not 8-aligned; exercises the <=7-row
    # sublane pad + single-tile path).
    B, N = 2, 20
    x = jax.random.normal(xkey1, (B, N, 3), dtype=jnp.float32)
    out = jax.block_until_ready(pointnet_feat(x, w1, b1, w2, b2, w3, b3))
    ref = _reference(x, w1, b1, w2, b2, w3, b3)
    assert out.shape == (B, 1024)
    assert jnp.allclose(out, ref, atol=3e-2, rtol=3e-2), "mismatch (test 1)"

    # Test 2: multi-tile with a ragged (partial) last tile; exercises the
    # in-kernel -inf masking and the running-max accumulation across tiles.
    B2, N2 = 2, 300
    x2 = jax.random.normal(xkey2, (B2, N2, 3), dtype=jnp.float32)
    out2 = jax.block_until_ready(
        pointnet_feat(x2, w1, b1, w2, b2, w3, b3, tile_n=128))
    ref2 = _reference(x2, w1, b1, w2, b2, w3, b3)
    assert out2.shape == (B2, 1024)
    assert jnp.allclose(out2, ref2, atol=3e-2, rtol=3e-2), "mismatch (test 2)"

    print("KERNEL_OK")
</pallas_src>

<mosaic_0001>
module attributes {stable_mosaic.version = 11 : i64} {
  func.func @_pointnet_kernel(%arg0: i32, %arg1: i32, %arg2: i32, %arg3: memref<1x24x3xf32, #tpu.memory_space<vmem>>, %arg4: memref<3x64xf32, #tpu.memory_space<vmem>>, %arg5: memref<1x64xf32, #tpu.memory_space<vmem>>, %arg6: memref<64x128xbf16, #tpu.memory_space<vmem>>, %arg7: memref<1x128xf32, #tpu.memory_space<vmem>>, %arg8: memref<128x1024xbf16, #tpu.memory_space<vmem>>, %arg9: memref<1x1024xf32, #tpu.memory_space<vmem>>, %arg10: memref<1x1x1024xf32, #tpu.memory_space<vmem>>, %arg11: memref<8x1024xf32, #tpu.memory_space<vmem>>) attributes {dimension_semantics = [#tpu.dimension_semantics<parallel>, #tpu.dimension_semantics<parallel>, #tpu.dimension_semantics<arbitrary>], iteration_bounds = array<i64: 2, 1, 1>, scalar_prefetch = 0 : i64, scratch_operands = 1 : i64, tpu.core_type = #tpu.core_type<tc>, window_params = [{transform_indices = @transform_0, window_bounds = array<i64: 1, 24, 3>}, {pipeline_mode = #tpu.pipeline_mode<synchronous>, transform_indices = @transform_1, window_bounds = array<i64: 3, 64>}, {pipeline_mode = #tpu.pipeline_mode<synchronous>, transform_indices = @transform_2, window_bounds = array<i64: 1, 64>}, {pipeline_mode = #tpu.pipeline_mode<synchronous>, transform_indices = @transform_3, window_bounds = array<i64: 64, 128>}, {pipeline_mode = #tpu.pipeline_mode<synchronous>, transform_indices = @transform_4, window_bounds = array<i64: 1, 128>}, {transform_indices = @transform_5, window_bounds = array<i64: 128, 1024>}, {transform_indices = @transform_6, window_bounds = array<i64: 1, 1024>}, {transform_indices = @transform_7, window_bounds = array<i64: 1, 1, 1024>}]} {
    %c0_i32 = arith.constant 0 : i32
    %0 = arith.cmpi eq, %arg2, %c0_i32 : i32
    %1 = arith.extui %0 : i1 to i32
    %c0_i32_0 = arith.constant 0 : i32
    %2 = arith.cmpi ne, %1, %c0_i32_0 : i32
    scf.if %2 {
      %cst_22 = arith.constant 0xFF800000 : f32
      %50 = vector.broadcast %cst_22 : f32 to vector<8x1024xf32>
      %c0_23 = arith.constant 0 : index
      %c0_24 = arith.constant 0 : index
      %51 = vector.load %arg11[%c0_23, %c0_24] : memref<8x1024xf32, #tpu.memory_space<vmem>>, vector<8x1024xf32>
      tpu.vector_store %arg11[%c0_23, %c0_24], %50 {strides = array<i32>} : memref<8x1024xf32, #tpu.memory_space<vmem>>, vector<8x1024xf32>,
    } else {
    }
    %c0 = arith.constant 0 : index
    %c0_1 = arith.constant 0 : index
    %c0_2 = arith.constant 0 : index
    %3 = vector.load %arg3[%c0, %c0_1, %c0_2] : memref<1x24x3xf32, #tpu.memory_space<vmem>>, vector<1x24x3xf32>
    %4 = vector.shape_cast %3 : vector<1x24x3xf32> to vector<24x3xf32>
    %c0_3 = arith.constant 0 : index
    %c0_4 = arith.constant 0 : index
    %5 = vector.load %arg4[%c0_3, %c0_4] : memref<3x64xf32, #tpu.memory_space<vmem>>, vector<3x64xf32>
    %6 = vector.extract_strided_slice %4 {offsets = [0, 0], sizes = [24, 1], strides = [1, 1]} : vector<24x3xf32> to vector<24x1xf32>
    %7 = vector.extract_strided_slice %5 {offsets = [0, 0], sizes = [1, 64], strides = [1, 1]} : vector<3x64xf32> to vector<1x64xf32>
    %8 = vector.broadcast %6 : vector<24x1xf32> to vector<24x64xf32>
    %9 = vector.broadcast %7 : vector<1x64xf32> to vector<24x64xf32>
    %10 = arith.mulf %8, %9 : vector<24x64xf32>
    %11 = vector.extract_strided_slice %4 {offsets = [0, 1], sizes = [24, 1], strides = [1, 1]} : vector<24x3xf32> to vector<24x1xf32>
    %12 = vector.extract_strided_slice %5 {offsets = [1, 0], sizes = [1, 64], strides = [1, 1]} : vector<3x64xf32> to vector<1x64xf32>
    %13 = vector.broadcast %11 : vector<24x1xf32> to vector<24x64xf32>
    %14 = vector.broadcast %12 : vector<1x64xf32> to vector<24x64xf32>
    %15 = arith.mulf %13, %14 : vector<24x64xf32>
    %16 = arith.addf %10, %15 : vector<24x64xf32>
    %17 = vector.extract_strided_slice %4 {offsets = [0, 2], sizes = [24, 1], strides = [1, 1]} : vector<24x3xf32> to vector<24x1xf32>
    %18 = vector.extract_strided_slice %5 {offsets = [2, 0], sizes = [1, 64], strides = [1, 1]} : vector<3x64xf32> to vector<1x64xf32>
    %19 = vector.broadcast %17 : vector<24x1xf32> to vector<24x64xf32>
    %20 = vector.broadcast %18 : vector<1x64xf32> to vector<24x64xf32>
    %21 = arith.mulf %19, %20 : vector<24x64xf32>
    %22 = arith.addf %16, %21 : vector<24x64xf32>
    %c0_5 = arith.constant 0 : index
    %c0_6 = arith.constant 0 : index
    %23 = vector.load %arg5[%c0_5, %c0_6] : memref<1x64xf32, #tpu.memory_space<vmem>>, vector<1x64xf32>
    %24 = vector.broadcast %23 : vector<1x64xf32> to vector<24x64xf32>
    %25 = arith.addf %22, %24 : vector<24x64xf32>
    %cst = arith.constant 0.000000e+00 : f32
    %26 = vector.broadcast %cst : f32 to vector<24x64xf32>
    %27 = arith.maximumf %25, %26 : vector<24x64xf32>
    %28 = arith.truncf %27 : vector<24x64xf32> to vector<24x64xbf16>
    %c0_7 = arith.constant 0 : index
    %c0_8 = arith.constant 0 : index
    %29 = vector.load %arg6[%c0_7, %c0_8] : memref<64x128xbf16, #tpu.memory_space<vmem>>, vector<64x128xbf16>
    %cst_9 = arith.constant dense<0.000000e+00> : vector<24x128xf32>
    %30 = tpu.matmul %28, %29, %cst_9 {dimension_numbers = #tpu.dot_dimension_numbers<[1], [0], [0], [1], [0, 0, 1, 1], [], []>} : vector<24x64xbf16>, vector<64x128xbf16>, vector<24x128xf32> -> vector<24x128xf32>
    %c0_10 = arith.constant 0 : index
    %c0_11 = arith.constant 0 : index
    %31 = vector.load %arg7[%c0_10, %c0_11] : memref<1x128xf32, #tpu.memory_space<vmem>>, vector<1x128xf32>
    %32 = vector.broadcast %31 : vector<1x128xf32> to vector<24x128xf32>
    %33 = arith.addf %30, %32 : vector<24x128xf32>
    %cst_12 = arith.constant 0.000000e+00 : f32
    %34 = vector.broadcast %cst_12 : f32 to vector<24x128xf32>
    %35 = arith.maximumf %33, %34 : vector<24x128xf32>
    %36 = arith.truncf %35 : vector<24x128xf32> to vector<24x128xbf16>
    %c0_13 = arith.constant 0 : index
    %c0_14 = arith.constant 0 : index
    %37 = vector.load %arg8[%c0_13, %c0_14] : memref<128x1024xbf16, #tpu.memory_space<vmem>>, vector<128x1024xbf16>
    %cst_15 = arith.constant dense<0.000000e+00> : vector<24x1024xf32>
    %38 = tpu.matmul %36, %37, %cst_15 {dimension_numbers = #tpu.dot_dimension_numbers<[1], [0], [0], [1], [0, 0, 1, 1], [], []>} : vector<24x128xbf16>, vector<128x1024xbf16>, vector<24x1024xf32> -> vector<24x1024xf32>
    %c0_16 = arith.constant 0 : index
    %c0_17 = arith.constant 0 : index
    %39 = vector.load %arg11[%c0_16, %c0_17] : memref<8x1024xf32, #tpu.memory_space<vmem>>, vector<8x1024xf32>
    %40 = vector.extract_strided_slice %38 {offsets = [0, 0], sizes = [8, 1024], strides = [1, 1]} : vector<24x1024xf32> to vector<8x1024xf32>
    %41 = vector.extract_strided_slice %38 {offsets = [8, 0], sizes = [8, 1024], strides = [1, 1]} : vector<24x1024xf32> to vector<8x1024xf32>
    %42 = vector.extract_strided_slice %38 {offsets = [16, 0], sizes = [8, 1024], strides = [1, 1]} : vector<24x1024xf32> to vector<8x1024xf32>
    %43 = arith.maximumf %40, %41 : vector<8x1024xf32>
    %44 = arith.maximumf %43, %42 : vector<8x1024xf32>
    %45 = arith.maximumf %39, %44 : vector<8x1024xf32>
    %c0_18 = arith.constant 0 : index
    %c0_19 = arith.constant 0 : index
    %46 = vector.load %arg11[%c0_18, %c0_19] : memref<8x1024xf32, #tpu.memory_space<vmem>>, vector<8x1024xf32>
    tpu.vector_store %arg11[%c0_18, %c0_19], %45 {strides = array<i32>} : memref<8x1024xf32, #tpu.memory_space<vmem>>, vector<8x1024xf32>,
    %c0_i32_20 = arith.constant 0 : i32
    %47 = arith.cmpi eq, %arg2, %c0_i32_20 : i32
    %48 = arith.extui %47 : i1 to i32
    %c0_i32_21 = arith.constant 0 : i32
    %49 = arith.cmpi ne, %48, %c0_i32_21 : i32
    scf.if %49 {
      %c0_22 = arith.constant 0 : index
      %c0_23 = arith.constant 0 : index
      %50 = vector.load %arg11[%c0_22, %c0_23] : memref<8x1024xf32, #tpu.memory_space<vmem>>, vector<8x1024xf32>
      %cst_24 = arith.constant dense<0xFF800000> : vector<1024xf32>
      %51 = vector.multi_reduction <maximumf>, %50, %cst_24 [0] : vector<8x1024xf32> to vector<1024xf32>
      %52 = vector.shape_cast %51 : vector<1024xf32> to vector<1x1024xf32>
      %c0_25 = arith.constant 0 : index
      %c0_26 = arith.constant 0 : index
      %53 = vector.load %arg9[%c0_25, %c0_26] : memref<1x1024xf32, #tpu.memory_space<vmem>>, vector<1x1024xf32>
      %54 = arith.addf %52, %53 : vector<1x1024xf32>
      %c0_27 = arith.constant 0 : index
      %c0_28 = arith.constant 0 : index
      %c0_29 = arith.constant 0 : index
      %55 = vector.load %arg10[%c0_27, %c0_28, %c0_29] : memref<1x1x1024xf32, #tpu.memory_space<vmem>>, vector<1x1x1024xf32>
      %56 = vector.shape_cast %55 : vector<1x1x1024xf32> to vector<1x1024xf32>
      %57 = vector.shape_cast %54 : vector<1x1024xf32> to vector<1x1x1024xf32>
      tpu.vector_store %arg10[%c0_27, %c0_28, %c0_29], %57 {strides = array<i32>} : memref<1x1x1024xf32, #tpu.memory_space<vmem>>, vector<1x1x1024xf32>,
    } else {
    }
    return
  }
  func.func @transform_0(%arg0: i32, %arg1: i32, %arg2: i32) -> (i32, i32, i32) {
    %c0_i32 = arith.constant 0 : i32
    %c0_i32_0 = arith.constant 0 : i32
    return %arg0, %arg2, %c0_i32 : i32, i32, i32
  }
  func.func @transform_1(%arg0: i32, %arg1: i32, %arg2: i32) -> (i32, i32) {
    %c0_i32 = arith.constant 0 : i32
    %c0_i32_0 = arith.constant 0 : i32
    %c0_i32_1 = arith.constant 0 : i32
    return %c0_i32, %c0_i32_0 : i32, i32
  }
  func.func @transform_2(%arg0: i32, %arg1: i32, %arg2: i32) -> (i32, i32) {
    %c0_i32 = arith.constant 0 : i32
    %c0_i32_0 = arith.constant 0 : i32
    %c0_i32_1 = arith.constant 0 : i32
    return %c0_i32, %c0_i32_0 : i32, i32
  }
  func.func @transform_3(%arg0: i32, %arg1: i32, %arg2: i32) -> (i32, i32) {
    %c0_i32 = arith.constant 0 : i32
    %c0_i32_0 = arith.constant 0 : i32
    %c0_i32_1 = arith.constant 0 : i32
    return %c0_i32, %c0_i32_0 : i32, i32
  }
  func.func @transform_4(%arg0: i32, %arg1: i32, %arg2: i32) -> (i32, i32) {
    %c0_i32 = arith.constant 0 : i32
    %c0_i32_0 = arith.constant 0 : i32
    %c0_i32_1 = arith.constant 0 : i32
    return %c0_i32, %c0_i32_0 : i32, i32
  }
  func.func @transform_5(%arg0: i32, %arg1: i32, %arg2: i32) -> (i32, i32) {
    %c0_i32 = arith.constant 0 : i32
    %c0_i32_0 = arith.constant 0 : i32
    return %c0_i32, %arg1 : i32, i32
  }
  func.func @transform_6(%arg0: i32, %arg1: i32, %arg2: i32) -> (i32, i32) {
    %c0_i32 = arith.constant 0 : i32
    %c0_i32_0 = arith.constant 0 : i32
    return %c0_i32, %arg1 : i32, i32
  }
  func.func @transform_7(%arg0: i32, %arg1: i32, %arg2: i32) -> (i32, i32, i32) {
    %c0_i32 = arith.constant 0 : i32
    %c0_i32_0 = arith.constant 0 : i32
    return %arg0, %c0_i32, %arg1 : i32, i32, i32
  }
}

</mosaic_0001>

<bundles_post_ra>
// kernel: pointnet_feat.1
= control target key start
LH: loop header
LB: loop body
LE: loop exit
PB: predicated region body
PF: predicated region fallthrough
CT: control target
= control target key end

     0   :  { %12 = vsyncpa [#allocation4], 0  ;;  %s1724_s24 = smov 0   ;;  %s1726_s25 = smov 0   ;;  %s1910_s0 = inlined_call_operand.vmem [shape: f32[2,24,3], index: 0, kind: input, shape index: {}]   ;;  %s1911_s1 = inlined_call_operand.vmem [shape: f32[3,64], index: 1, kind: input, shape index: {}]   ;;  %s1912_s2 = inlined_call_operand.vmem [shape: f32[1,64], index: 2, kind: input, shape index: {}]   ;;  %s1913_s3 = inlined_call_operand.vmem [shape: bf16[64,128], index: 3, kind: input, shape index: {}]   ;;  %s1914_s4 = inlined_call_operand.vmem [shape: f32[1,128], index: 4, kind: input, shape index: {}]   ;;  %s1915_s5 = inlined_call_operand.hbm [shape: bf16[128,1024], index: 5, kind: input, shape index: {}]   ;;  %s1916_s6 = inlined_call_operand.vmem [shape: f32[1,1024], index: 6, kind: input, shape index: {}]   ;;  %s1917_s7 = inlined_call_operand.vmem [shape: f32[2,1,1024], index: 7, kind: output, shape index: {}]  }
   0x1   :  { %s1728_s26 = smov 0  }
   0x2 LB: > { %s1469_s27 = sadd.s32 4294967295, %s1675_s26   ;;  %s37_s28 = sadd.s32 1, %s1671_s25  ;;  %s1675_s26 = sphi %s1728_s26, %s18_s26   ;;  %s1671_s25 = sphi %s1726_s25, %s1927_s25   ;;  %s1667_s24 = sphi %s1724_s24, %s1926_s24  }
   0x3   : > { %p39_p0 = scmp.ge.s32.totalorder %s37_s28, 2  ;;  %p1471_p1 = scmp.ge.s32.totalorder %s1675_s26, 1 }
   0x4   : > { %p234_p2 = scmp.lt.s32.totalorder %s1675_s26, 3  ;;  %p1749_p4 = scmp.eq.s32.totalorder %s1469_s27, 0 }
   0x5   : > { %s1929_s28 = smov (%p39_p0, %s37_s28), 0  ;;  %s1677_s8 = smov [#allocation3]  }
   0x6   : > { %p1745_p3 = pnand %p1471_p1, %p234_p2  ;;  %s261_s9 = sshll.u32 %s1677_s8, 4  ;;  %s262_s9 = int_to_ptr.vmem [resolvable:$true] %s261_s9 }
   0x7   : > { %s1922_s30 = scalar_select %p1749_p4, 1, 0 }
   0x8   : > { %s1921_s29 = scalar_select %p1745_p3, 1, 0 }
   0x9   : > { %p1576_p5 = pneg %p1745_p3  ;;  %s1621_s13 = scalar_lea.hbm %s1915_s5, 8192 }
   0xa   : > { %p1622_p7 = scmp.ne.s32.totalorder %s1915_s5, %s1621_s13  ;;  %p1628_p11 = scmp.lt.u32.totalorder %s1621_s13, %s1915_s5 }
   0xb   : > { %p1757_p6 = pnand %p1749_p4, %p1576_p5 }
   0xd   : > { %p1623_p8 = pneg %p1757_p6 }
   0xf   : > { %p1624_p9 = pnand %p1623_p8, %p1622_p7 }
  0x11   : > { %p1625_p10 = pneg %p1624_p9 }
  0x13   : > { %p1630_p12 = pnand %p1628_p11, %p1625_p10 }
  0x15   : > { %1633 = shalt.err (!%p1630_p12)
}
  0x16   : > { %s1634_s18 = scalar_lea.vmem %s262_s9, 8192  ;;  %p1642_p2 = scmp.lt.s32.totalorder %s262_s9, %s262_s9 }
  0x17   : > { %p1635_p13 = scmp.ne.s32.totalorder %s262_s9, %s1634_s18  ;;  %p1643_p5 = scmp.lt.s32.totalorder %s1634_s18, %s1634_s18 }
  0x19   : > { %p1637_p0 = pnand %p1635_p13, %p1623_p8  ;;  %p1644_p4 = por %p1643_p5, %p1642_p2 }
  0x1b   : > { %p1638_p1 = pneg %p1637_p0 }
  0x1d   : > { %p1645_p3 = pnand %p1644_p4, %p1638_p1 }
  0x1f   : > { %1648 = shalt.err (!%p1645_p3)
}
  0x20   : > { %s1678_s19 = smov 512   ;;  %s1679_s20 = smov 32  }
  0x21   : > { %1579 = dma.hbm_to_vmem [thread:$0]  (!%p1757_p6), %s1915_s5, 8192, %s262_s9, [#allocation4], %s1678_s19, %s1678_s19, %s1679_s20  }
  0x22   : > { %p1924_p7 = scmp.ne.s32.totalorder %s1921_s29, 0 }
  0x23   : > { %p1925_p9 = scmp.ne.s32.totalorder (!%p1924_p7), %s1922_s30, 0 }
  0x24   : > { %298 = sbr.rel (%p1924_p7) target bundleno = 707 (0x2c3), region = 48 }
  0x2b   : > { %1662 = dma.done.wait (%p1925_p9), [#allocation4], 8192  }
  0x2c   : > { %1664 = vsyncadd (%p1925_p9), [#allocation4], 4294959104  ;;  %p342_p3 = scmp.lt.s32.totalorder %s1667_s24, 1  ;;  %v1680_v0 = vmov 1   ;;  %v1681_v1 = vmov 0   ;;  %v1617_v5 = vld [vmem:[%s1913_s3] sm:$0xff]   ;;  %v398_v38 = vlaneseq }
  0x2d   : > { %1614 = vset.pattern.permute.xlu1 %v1680_v0  ;;  %1613 = vset.pattern.permute.xlu0 %v1681_v1  ;;  %v1682_v6 = vmov 2   ;;  %v1618_v7 = vld [vmem:[%s1913_s3 + $0x8] sm:$0xff]   ;;  %v1619_v8 = vld [vmem:[%s1913_s3 + $0x10] sm:$0xff]   ;;  %v1620_v9 = vld [vmem:[%s1913_s3 + $0x18] sm:$0xff]   ;;  %vm503_vm0 = vcmask 523264  }
  0x2e   : > { %s1931_s24 = smov (!%p342_p3, %s1667_s24), 1  ;;  %979 = vmatprep.mubr.bf16.mxu1 %v1681_v1  ;;  %1559 = vmatprep.subr.bf16.mxu0 %v1617_v5  ;;  %v563_v10 = vld [vmem:[#allocation3] sm:$0xff]  ;;  %v1805_v12 = vld [vmem:[#allocation3 + $0x8] sm:$0xff]  ;;  %v1813_v39 = vshrl.u32 %v398_v38, 7 }
  0x2f   : > { %s1571_s23 = smul.u32 24, %s1931_s24  ;;  %1560 = vmatpush3.bf16.msra.mxu0 %v1617_v5  ;;  %v567_v11 = vld [vmem:[#allocation3 + $0x20] sm:$0xff]  ;;  %v1807_v14 = vld [vmem:[#allocation3 + $0x28] sm:$0xff]  ;;  %s1478_s27 = sshll.u32 %s1931_s24, 3 }
  0x30   : > { %1561 = vmatprep.subr.bf16.mxu0 %v1618_v7  ;;  %v1488_v13 = vcombine.high %v563_v10, %v567_v11  ;;  %v1487_v15 = vcombine.low %v563_v10, %v567_v11  ;;  %v571_v16 = vld [vmem:[#allocation3 + $0x40] sm:$0xff]  ;;  %v1489_v18 = vcombine.low %v1805_v12, %v1807_v14  ;;  %v1490_v19 = vcombine.high %v1805_v12, %v1807_v14  ;;  %v608_v12 = vld [vmem:[#allocation3 + $0x168] sm:$0xff]  ;;  %s364_s30 = scalar_lea.vmem %s1917_s7, %s1478_s27 }
  0x31   : > { %s349_s8 = scalar_lea.vmem %s1910_s0, %s1571_s23  ;;  %v575_v17 = vld [vmem:[#allocation3 + $0x60] sm:$0xff]  ;;  %v419_v42 = vsub.s32 1, %v1813_v39  ;;  %v400_v43 = vsub.s32 0, %v1813_v39  ;;  %v441_v49 = vsub.s32 2, %v1813_v39 }
  0x32   : > { %v379_v2 = vld [vmem:[%s349_s8] sm:$0xff]  ;;  %v380_v3 = vld [vmem:[%s349_s8 + $0x8] sm:$0xff]  ;;  %v381_v4 = vld [vmem:[%s349_s8 + $0x10] sm:$0xff]  ;;  %v1496_v20 = vcombine.high %v571_v16, %v575_v17  ;;  %947 = vmatprep.subr.bf16.mxu1 %v1488_v13  ;;  %v1495_v21 = vcombine.low %v571_v16, %v575_v17 }
  0x33   : > { %406 = vperm.xlu1 %1614, %v379_v2   ;;  %385 = vperm.xlu0 %1613, %v379_v2   ;;  %v579_v22 = vld [vmem:[#allocation3 + $0x80] sm:$0xff]  ;;  %v572_v17 = vld [vmem:[#allocation3 + $0x48] sm:$0xff] }
  0x34   : > { %1562 = vmatpush3.bf16.msra.mxu0 %v1618_v7  ;;  %948 = vmatpush1.bf16.msra.mxu1 %v1487_v15  ;;  %v583_v23 = vld [vmem:[#allocation3 + $0xa0] sm:$0xff] }
  0x35   : > { %1563 = vmatprep.subr.bf16.mxu0 %v1619_v8  ;;  %949 = vmatprep.subr.bf16.mxu1 %v1496_v20  ;;  %v1504_v24 = vcombine.high %v579_v22, %v583_v23  ;;  %v1503_v25 = vcombine.low %v579_v22, %v583_v23  ;;  %v587_v26 = vld [vmem:[#allocation3 + $0xc0] sm:$0xff]  ;;  %v580_v23 = vld [vmem:[#allocation3 + $0x88] sm:$0xff] }
  0x36   : > { %v591_v27 = vld [vmem:[#allocation3 + $0xe0] sm:$0xff] }
  0x37   : > { %410 = vperm.xlu1 %1614, %v380_v3   ;;  %390 = vperm.xlu0 %1613, %v380_v3   ;;  %v1512_v28 = vcombine.high %v587_v26, %v591_v27  ;;  %v1511_v29 = vcombine.low %v587_v26, %v591_v27  ;;  %v595_v30 = vld [vmem:[#allocation3 + $0x100] sm:$0xff]  ;;  %v588_v27 = vld [vmem:[#allocation3 + $0xc8] sm:$0xff] }
  0x38   : > { %1564 = vmatpush3.bf16.msra.mxu0 %v1619_v8  ;;  %950 = vmatpush1.bf16.msra.mxu1 %v1495_v21  ;;  %v599_v31 = vld [vmem:[#allocation3 + $0x120] sm:$0xff] }
  0x39   : > { %1565 = vmatprep.subr.bf16.mxu0 %v1620_v9  ;;  %951 = vmatprep.subr.bf16.mxu1 %v1504_v24  ;;  %v1520_v32 = vcombine.high %v595_v30, %v599_v31  ;;  %v1519_v33 = vcombine.low %v595_v30, %v599_v31  ;;  %v603_v34 = vld [vmem:[#allocation3 + $0x140] sm:$0xff]  ;;  %v584_v24 = vld [vmem:[#allocation3 + $0xa8] sm:$0xff] }
  0x3a   : > { %v607_v35 = vld [vmem:[#allocation3 + $0x160] sm:$0xff]  ;;  %v1506_v26 = vcombine.high %v580_v23, %v584_v24  ;;  %v596_v31 = vld [vmem:[#allocation3 + $0x108] sm:$0xff] }
  0x3b   : > { %414 = vperm.xlu1 %1614, %v381_v4   ;;  %395 = vperm.xlu0 %1613, %v381_v4   ;;  %v1528_v36 = vcombine.high %v603_v34, %v607_v35  ;;  %v1527_v37 = vcombine.low %v603_v34, %v607_v35  ;;  %v382_v44 = vld [vmem:[%s1911_s1] sm:$0x7]  ;;  %v604_v35 = vld [vmem:[#allocation3 + $0x148] sm:$0xff] }
  0x3c   : > { %1566 = vmatpush3.bf16.msra.mxu0 %v1620_v9  ;;  %952 = vmatpush1.bf16.msra.mxu1 %v1503_v25  ;;  %v420_v47 = vrot.slane %v382_v44, %v419_v42  ;;  %v401_v48 = vrot.slane %v382_v44, %v400_v43  ;;  %v442_v56 = vrot.slane %v382_v44, %v441_v49  ;;  %v615_v38 = vld [vmem:[#allocation3 + $0x1a0] sm:$0xff]  ;;  %v616_v44 = vld [vmem:[#allocation3 + $0x1a8] sm:$0xff] }
  0x3d   : > { %998 = vmatprep.subr.bf16.mxu0 %v1490_v19  ;;  %953 = vmatprep.subr.bf16.mxu1 %v1512_v28  ;;  %v576_v19 = vld [vmem:[#allocation3 + $0x68] sm:$0xff] }
  0x3e   : > { %v1498_v22 = vcombine.high %v572_v17, %v576_v19  ;;  %v1497_v25 = vcombine.low %v572_v17, %v576_v19  ;;  %v592_v28 = vld [vmem:[#allocation3 + $0xe8] sm:$0xff] }
  0x3f   : > { %1616 = vset.pattern.permute.xlu1 %v1682_v6  ;;  %1615 = vset.pattern.permute.xlu0 %v1682_v6  ;;  %v1514_v30 = vcombine.high %v588_v27, %v592_v28 }
  0x40   : > { %432 = vperm.xlu1 %1616, %v380_v3   ;;  %428 = vperm.xlu0 %1615, %v379_v2   ;;  %v1479_v2 = vld [vmem:[%s1912_s2] ss:$0 sm:$0xff] }
  0x41   : > { %954 = vmatpush1.bf16.msra.mxu1 %v1511_v29  ;;  %v1505_v29 = vcombine.low %v580_v23, %v584_v24  ;;  %v585_v23 = vld [vmem:[#allocation3 + $0xb0] sm:$0xff]  ;;  %v582_v24 = vld [vmem:[#allocation3 + $0x98] sm:$0xff] }
  0x42   : > { %955 = vmatprep.subr.bf16.mxu1 %v1520_v32  ;;  %v600_v32 = vld [vmem:[#allocation3 + $0x128] sm:$0xff] }
  0x43   : > { %v1522_v34 = vcombine.high %v596_v31, %v600_v32  ;;  %v1521_v14 = vcombine.low %v596_v31, %v600_v32  ;;  %v589_v31 = vld [vmem:[#allocation3 + $0xd0] sm:$0xff] }
  0x44   : > { %436 = vperm.xlu1 %1616, %v381_v4   ;;  %v593_v32 = vld [vmem:[#allocation3 + $0xf0] sm:$0xff] }
  0x45   : > { %956 = vmatpush1.bf16.msra.mxu1 %v1519_v33  ;;  %v1513_v33 = vcombine.low %v588_v27, %v592_v28 }
  0x46   : > { %957 = vmatprep.subr.bf16.mxu1 %v1528_v36  ;;  %v1529_v36 = vcombine.low %v604_v35, %v608_v12 }
  0x49   : > { %958 = vmatpush1.bf16.msra.mxu1 %v1527_v37  ;;  %v611_v37 = vld [vmem:[#allocation3 + $0x180] sm:$0xff] }
  0xb2   : > { %v407_v40 = vpop.permute.xlu1 %406  ;;  %v386_v41 = vpop.permute.xlu0 %385 }
  0xb3   : > { %v421_v52 = vmul.f32 %v420_v47, %v407_v40  ;;  %v402_v53 = vmul.f32 %v401_v48, %v386_v41  ;;  %v612_v40 = vld [vmem:[#allocation3 + $0x188] sm:$0xff]  ;;  %v1536_v41 = vcombine.high %v611_v37, %v615_v38 }
  0xb5   : > { %v424_v57 = vadd.f32 %v421_v52, %v402_v53  ;;  %959 = vmatprep.subr.bf16.mxu1 %v1536_v41  ;;  %v624_v53 = vld [vmem:[#allocation3 + $0x1e8] sm:$0xff]  ;;  %v602_v41 = vld [vmem:[#allocation3 + $0x138] sm:$0xff] }
  0xb6   : > { %v411_v45 = vpop.permute.xlu1 %410  ;;  %v391_v46 = vpop.permute.xlu0 %390 }
  0xb7   : > { %v422_v54 = vmul.f32 %v420_v47, %v411_v45  ;;  %v403_v55 = vmul.f32 %v401_v48, %v391_v46  ;;  %v1537_v45 = vcombine.low %v612_v40, %v616_v44  ;;  %v1538_v46 = vcombine.high %v612_v40, %v616_v44  ;;  %v598_v40 = vld [vmem:[#allocation3 + $0x118] sm:$0xff] }
  0xb8   : > { %v1515_v44 = vcombine.low %v589_v31, %v593_v32 }
  0xb9   : > { %v425_v58 = vadd.f32 %v422_v54, %v403_v55 }
  0xba   : > { %v415_v50 = vpop.permute.xlu1 %414  ;;  %v396_v51 = vpop.permute.xlu0 %395 }
  0xbb   : > { %v423_v61 = vmul.f32 %v420_v47, %v415_v50  ;;  %v404_v62 = vmul.f32 %v401_v48, %v396_v51  ;;  %v1535_v47 = vcombine.low %v611_v37, %v615_v38  ;;  %v619_v48 = vld [vmem:[#allocation3 + $0x1c0] sm:$0xff]  ;;  %v620_v51 = vld [vmem:[#allocation3 + $0x1c8] sm:$0xff]  ;;  %v597_v37 = vld [vmem:[#allocation3 + $0x110] sm:$0xff] }
  0xbc   : > { %v623_v50 = vld [vmem:[#allocation3 + $0x1e0] sm:$0xff]  ;;  %v1545_v54 = vcombine.low %v620_v51, %v624_v53  ;;  %v1546_v55 = vcombine.high %v620_v51, %v624_v53  ;;  %v601_v38 = vld [vmem:[#allocation3 + $0x130] sm:$0xff]  ;;  %v606_v51 = vld [vmem:[#allocation3 + $0x158] sm:$0xff] }
  0xbd   : > { %v426_v6 = vadd.f32 %v423_v61, %v404_v62  ;;  %960 = vmatpush1.bf16.msra.mxu1 %v1535_v47  ;;  %v1544_v52 = vcombine.high %v619_v48, %v623_v50  ;;  %v570_v61 = vld [vmem:[#allocation3 + $0x38] sm:$0xff]  ;;  %v1526_v47 = vcombine.high %v598_v40, %v602_v41  ;;  %v1523_v53 = vcombine.low %v597_v37, %v601_v38 }
  0xbf   : > { %v433_v59 = vpop.permute.xlu1 %432  ;;  %v429_v60 = vpop.permute.xlu0 %428  ;;  %961 = vmatprep.subr.bf16.mxu1 %v1544_v52  ;;  %v610_v52 = vld [vmem:[#allocation3 + $0x178] sm:$0xff] }
  0xc0   : > { %v444_v63 = vmul.f32 %v442_v56, %v433_v59  ;;  %v443_v0 = vmul.f32 %v442_v56, %v429_v60  ;;  %v566_v59 = vld [vmem:[#allocation3 + $0x18] sm:$0xff] }
  0xc2   : > { %v447_v3 = vadd.f32 %v444_v63, %v425_v58  ;;  %v446_v4 = vadd.f32 %v443_v0, %v424_v57  ;;  %v565_v57 = vld [vmem:[#allocation3 + $0x10] sm:$0xff]  ;;  %v1493_v63 = vcombine.low %v566_v59, %v570_v61  ;;  %v1494_v0 = vcombine.high %v566_v59, %v570_v61  ;;  %v614_v59 = vld [vmem:[#allocation3 + $0x198] sm:$0xff] }
  0xc3   : > { %v437_v5 = vpop.permute.xlu1 %436  ;;  %v569_v58 = vld [vmem:[#allocation3 + $0x30] sm:$0xff] }
  0xc4   : > { %v445_v7 = vmul.f32 %v442_v56, %v437_v5  ;;  %v456_v8 = vadd.f32 %v1479_v2, %v446_v4  ;;  %v457_v9 = vadd.f32 %v1479_v2, %v447_v3  ;;  %v1543_v56 = vcombine.low %v619_v48, %v623_v50  ;;  %v605_v48 = vld [vmem:[#allocation3 + $0x150] sm:$0xff] }
  0xc5   : > { %v1492_v60 = vcombine.high %v565_v57, %v569_v58  ;;  %v1491_v62 = vcombine.low %v565_v57, %v569_v58  ;;  %v609_v50 = vld [vmem:[#allocation3 + $0x170] sm:$0xff] }
  0xc6   : > { %v448_v10 = vadd.f32 %v445_v7, %v426_v6  ;;  %v459_v11 = vmax.f32 %v456_v8, 0.0  ;;  %v460_v13 = vmax.f32 %v457_v9, 0.0  ;;  %962 = vmatpush1.bf16.msra.mxu1 %v1543_v56  ;;  %v573_v9 = vld [vmem:[#allocation3 + $0x50] sm:$0xff]  ;;  %v1534_v56 = vcombine.high %v606_v51, %v610_v52 }
  0xc7   : > { %1049 = vmatprep.subr.bf16.mxu1 %v1492_v60  ;;  %v613_v57 = vld [vmem:[#allocation3 + $0x190] sm:$0xff]  ;;  %v618_v60 = vld [vmem:[#allocation3 + $0x1b8] sm:$0xff]  ;;  %v1531_v61 = vcombine.low %v605_v48, %v609_v50 }
  0xc8   : > { %v458_v15 = vadd.f32 %v1479_v2, %v448_v10  ;;  %v462_v16 = vpack.c.bf16 %v460_v13, %v459_v11  ;;  %v1480_v2 = vld [vmem:[%s1914_s4] ss:$0 sm:$0xff]  ;;  %v577_v10 = vld [vmem:[#allocation3 + $0x70] sm:$0xff]  ;;  %v574_v11 = vld [vmem:[#allocation3 + $0x58] sm:$0xff] }
  0xc9   : > { %v578_v13 = vld [vmem:[#allocation3 + $0x78] sm:$0xff]  ;;  %v617_v58 = vld [vmem:[#allocation3 + $0x1b0] sm:$0xff] }
  0xca   : > { %v461_v20 = vmax.f32 %v458_v15, 0.0  ;;  %1567 = vmatprep.mubr.msk.bf16.mxu0 %vm503_vm0, %v462_v16  ;;  %v1501_v27 = vcombine.low %v574_v11, %v578_v13 }
  0xcc   : > { %v463_v21 = vpack.c.bf16 %v461_v20, %v461_v20  ;;  %v1500_v20 = vcombine.high %v573_v9, %v577_v10 }
  0xce   : > { %1568 = vmatmul.mubr.msk.bf16.vlgmr.msra.gmra.mrb[0].mxu0 %vm503_vm0, %v463_v21  ;;  %v1502_v21 = vcombine.high %v574_v11, %v578_v13 }
  0xcf   : > { %999 = vmatpush1.bf16.msra.mxu0 %v1489_v18  ;;  %1030 = vmatprep.mubr.bf16.mxu0 %v1681_v1  ;;  %v1530_v18 = vcombine.high %v604_v35, %v608_v12 }
  0xd0   : > { %1000 = vmatprep.subr.bf16.mxu0 %v1498_v22  ;;  %v581_v22 = vld [vmem:[#allocation3 + $0x90] sm:$0xff] }
  0xd1   : > { %v1507_v35 = vcombine.low %v581_v22, %v585_v23 }
  0xd3   : > { %1001 = vmatpush1.bf16.msra.mxu0 %v1497_v25  ;;  %v586_v25 = vld [vmem:[#allocation3 + $0xb8] sm:$0xff] }
  0xd4   : > { %1002 = vmatprep.subr.bf16.mxu0 %v1506_v26  ;;  %v1499_v26 = vcombine.low %v573_v9, %v577_v10  ;;  %v1509_v12 = vcombine.low %v582_v24, %v586_v25 }
  0xd7   : > { %1003 = vmatpush1.bf16.msra.mxu0 %v1505_v29  ;;  %v1508_v29 = vcombine.high %v581_v22, %v585_v23 }
  0xd8   : > { %1004 = vmatprep.subr.bf16.mxu0 %v1514_v30  ;;  %v1510_v30 = vcombine.high %v582_v24, %v586_v25 }
  0xdb   : > { %1005 = vmatpush1.bf16.msra.mxu0 %v1513_v33  ;;  %v590_v33 = vld [vmem:[#allocation3 + $0xd8] sm:$0xff] }
  0xdc   : > { %1006 = vmatprep.subr.bf16.mxu0 %v1522_v34  ;;  %v594_v34 = vld [vmem:[#allocation3 + $0xf8] sm:$0xff] }
  0xdf   : > { %1007 = vmatpush1.bf16.msra.mxu0 %v1521_v14 }
  0xe0   : > { %1008 = vmatprep.subr.bf16.mxu0 %v1530_v18  ;;  %v1516_v18 = vcombine.high %v589_v31, %v593_v32 }
  0xe3   : > { %1009 = vmatpush1.bf16.msra.mxu0 %v1529_v36  ;;  %v1518_v36 = vcombine.high %v590_v33, %v594_v34 }
  0xe4   : > { %1010 = vmatprep.subr.bf16.mxu0 %v1538_v46  ;;  %v1524_v46 = vcombine.high %v597_v37, %v601_v38 }
  0xe7   : > { %1011 = vmatpush1.bf16.msra.mxu0 %v1537_v45  ;;  %v1517_v45 = vcombine.low %v590_v33, %v594_v34 }
  0xe8   : > { %1012 = vmatprep.subr.bf16.mxu0 %v1546_v55  ;;  %v1532_v55 = vcombine.high %v605_v48, %v609_v50 }
  0xeb   : > { %1013 = vmatpush1.bf16.msra.mxu0 %v1545_v54  ;;  %v1525_v54 = vcombine.low %v598_v40, %v602_v41 }
  0xec   : > { %1100 = vmatprep.subr.bf16.mxu0 %v1494_v0  ;;  %v1542_v0 = vcombine.high %v614_v59, %v618_v60 }
 0x1a1   : > { %v1569_v3 = vpop.f32.mrb[0].mxu0 }
 0x1a2   : > { %v544_v4 = vpop.f32.mrb[1].mxu0  ;;  %v553_v17 = vadd.f32 %v1569_v3, %v1480_v2  ;;  %v625_v3 = vld [vmem:[#allocation3 + $0x1f0] sm:$0xff] }
 0x1a3   : > { %v545_v5 = vadd.f32 %v1480_v2, %v544_v4  ;;  %v1570_v6 = vpop.f32.mrb[2].mxu0  ;;  %v622_v4 = vld [vmem:[#allocation3 + $0x1d8] sm:$0xff] }
 0x1a4   : > { %v547_v7 = vpop.f32.mrb[3].mxu0  ;;  %v560_v28 = vmax.f32 %v553_v17, 0.0  ;;  %v1539_v6 = vcombine.low %v613_v57, %v617_v58 }
 0x1a5   : > { %v548_v8 = vadd.f32 %v1480_v2, %v547_v7  ;;  %v558_v15 = vmax.f32 %v545_v5, 0.0  ;;  %v621_v2 = vld [vmem:[#allocation3 + $0x1d0] sm:$0xff]  ;;  %v626_v5 = vld [vmem:[#allocation3 + $0x1f8] sm:$0xff]  ;;  %v1541_v7 = vcombine.low %v614_v59, %v618_v60 }
 0x1a6   : > { %v1843_v14 = vpack.c.bf16 %v560_v28, %v560_v28  ;;  %v1550_v9 = vcombine.high %v622_v4, %v626_v5  ;;  %v1547_v10 = vcombine.low %v621_v2, %v625_v3  ;;  %v1549_v11 = vcombine.low %v622_v4, %v626_v5 }
 0x1a7   : > { %v559_v16 = vmax.f32 %v548_v8, 0.0  ;;  %v1548_v8 = vcombine.high %v621_v2, %v625_v3 }
 0x1a9   : > { %v1837_v19 = vpack.c.bf16 %v559_v16, %v558_v15 }
 0x1ab   : > { %980 = vmatmul.mubr.bf16.vlgmr.msra.gmra.mrb[0].mxu1 %v1837_v19  ;;  %1031 = vmatmul.mubr.bf16.vlgmr.msra.gmra.mrb[4].mxu0 %v1837_v19 }
 0x1ac   : > { %1050 = vmatpush1.bf16.msra.mxu1 %v1491_v62  ;;  %1101 = vmatpush1.bf16.msra.mxu0 %v1493_v63  ;;  %v1533_v62 = vcombine.low %v606_v51, %v610_v52  ;;  %v1540_v63 = vcombine.high %v613_v57, %v617_v58  ;;  %v1683_v51 = vmov 1966171168  }
 0x1ad   : > { %1051 = vmatprep.subr.bf16.mxu1 %v1500_v20  ;;  %1102 = vmatprep.subr.bf16.mxu0 %v1502_v21  ;;  %v1313_v52 = vunpack.c.l.s4 %v1683_v51 }
 0x1ae   : > { %989 = vmatprep.mubr.bf16.mxu1 %v1681_v1  ;;  %1040 = vmatprep.mubr.bf16.mxu0 %v1681_v1 }
 0x1af   : > { %v1314_v2 = vunpack.c.0.s8 %v1313_v52 }
 0x1b0   : > { %1052 = vmatpush1.bf16.msra.mxu1 %v1499_v26  ;;  %1103 = vmatpush1.bf16.msra.mxu0 %v1501_v27 }
 0x1b1   : > { %1053 = vmatprep.subr.bf16.mxu1 %v1508_v29  ;;  %1104 = vmatprep.subr.bf16.mxu0 %v1510_v30 }
 0x1b3   : > { %990 = vmatmul.mubr.bf16.gmra.mrb[4].mxu1 %v1843_v14  ;;  %1041 = vmatmul.mubr.bf16.gmra.mrb[8].mxu0 %v1843_v14 }
 0x1b4   : > { %1054 = vmatpush1.bf16.msra.mxu1 %v1507_v35  ;;  %1105 = vmatpush1.bf16.msra.mxu0 %v1509_v12 }
 0x1b5   : > { %1055 = vmatprep.subr.bf16.mxu1 %v1516_v18  ;;  %1106 = vmatprep.subr.bf16.mxu0 %v1518_v36 }
 0x1b6   : > { %1081 = vmatprep.mubr.bf16.mxu1 %v1681_v1  ;;  %1132 = vmatprep.mubr.bf16.mxu0 %v1681_v1 }
 0x1b8   : > { %1056 = vmatpush1.bf16.msra.mxu1 %v1515_v44  ;;  %1107 = vmatpush1.bf16.msra.mxu0 %v1517_v45 }
 0x1b9   : > { %1057 = vmatprep.subr.bf16.mxu1 %v1524_v46  ;;  %1108 = vmatprep.subr.bf16.mxu0 %v1526_v47  ;;  %v1858_v46 = vld [vmem:[%s1916_s6] sm:$0xff] }
 0x1ba   : > { %v1259_v57 = vrot.slane %v1858_v46, %v419_v42  ;;  %v1255_v60 = vrot.slane %v1858_v46, %v400_v43  ;;  %v1872_v43 = vsub.s32 %v1314_v2, %v1813_v39 }
 0x1bc   : > { %1058 = vmatpush1.bf16.msra.mxu1 %v1523_v53  ;;  %1109 = vmatpush1.bf16.msra.mxu0 %v1525_v54  ;;  %v1266_v54 = vsub.s32 3, %v1813_v39 }
 0x1bd   : > { %1059 = vmatprep.subr.bf16.mxu1 %v1532_v55  ;;  %1110 = vmatprep.subr.bf16.mxu0 %v1534_v56 }
 0x1be   : > { %v1267_v4 = vrot.slane %v1858_v46, %v1266_v54 }
 0x1c0   : > { %1060 = vmatpush1.bf16.msra.mxu1 %v1531_v61  ;;  %1111 = vmatpush1.bf16.msra.mxu0 %v1533_v62  ;;  %v1263_v61 = vrot.slane %v1858_v46, %v441_v49 }
 0x1c1   : > { %1061 = vmatprep.subr.bf16.mxu1 %v1540_v63  ;;  %1112 = vmatprep.subr.bf16.mxu0 %v1542_v0 }
 0x1c4   : > { %1062 = vmatpush1.bf16.msra.mxu1 %v1539_v6  ;;  %1113 = vmatpush1.bf16.msra.mxu0 %v1541_v7 }
 0x1c5   : > { %1063 = vmatprep.subr.bf16.mxu1 %v1548_v8  ;;  %1114 = vmatprep.subr.bf16.mxu0 %v1550_v9 }
 0x1c8   : > { %1064 = vmatpush1.bf16.msra.mxu1 %v1547_v10  ;;  %1115 = vmatpush1.bf16.msra.mxu0 %v1549_v11 }
 0x1cb   : > { %1082 = vmatmul.mubr.bf16.vlgmr.msra.gmra.mrb[8].mxu1 %v1837_v19  ;;  %1133 = vmatmul.mubr.bf16.vlgmr.msra.gmra.mrb[12].mxu0 %v1837_v19 }
 0x1cc   : > { %1091 = vmatprep.mubr.bf16.mxu1 %v1681_v1  ;;  %1142 = vmatprep.mubr.bf16.mxu0 %v1681_v1 }
 0x1d3   : > { %1092 = vmatmul.mubr.bf16.gmra.mrb[12].mxu1 %v1843_v14  ;;  %1143 = vmatmul.mubr.bf16.gmra.mrb[16].mxu0 %v1843_v14 }
 0x27e   : > { %v981_v13 = vpop.f32.mrb[0].mxu1  ;;  %v1032_v15 = vpop.f32.mrb[4].mxu0 }
 0x27f   : > { %v983_v16 = vpop.f32.mrb[1].mxu1  ;;  %v1034_v17 = vpop.f32.mrb[5].mxu0 }
 0x280   : > { %v985_v20 = vpop.f32.mrb[2].mxu1  ;;  %v1036_v21 = vpop.f32.mrb[6].mxu0 }
 0x281   : > { %v1159_v22 = vmax.f32 %v981_v13, %v985_v20  ;;  %v1161_v23 = vmax.f32 %v1032_v15, %v1036_v21  ;;  %v987_v24 = vpop.f32.mrb[3].mxu1  ;;  %v1038_v25 = vpop.f32.mrb[7].mxu0 }
 0x282   : > { %v1160_v26 = vmax.f32 %v983_v16, %v987_v24  ;;  %v1162_v19 = vmax.f32 %v1034_v17, %v1038_v25 }
 0x286   : > { %v991_v27 = vpop.f32.mrb[4].mxu1  ;;  %v1042_v28 = vpop.f32.mrb[8].mxu0 }
 0x287   : > { %v1167_v29 = vmax.f32 %v1159_v22, %v991_v27  ;;  %v1169_v1 = vmax.f32 %v1161_v23, %v1042_v28  ;;  %v993_v30 = vpop.f32.mrb[5].mxu1  ;;  %v1044_v31 = vpop.f32.mrb[9].mxu0 }
 0x288   : > { %v1168_v32 = vmax.f32 %v1160_v26, %v993_v30  ;;  %v1170_v33 = vmax.f32 %v1162_v19, %v1044_v31  ;;  %v995_v34 = vpop.f32.mrb[6].mxu1  ;;  %v1046_v35 = vpop.f32.mrb[10].mxu0 }
 0x289   : > { %v1202_v12 = vrot.slane %v1167_v29, 4  ;;  %v1214_v14 = vrot.slane %v1169_v1, 4  ;;  %v996_v18 = vpop.f32.mrb[7].mxu1  ;;  %v1047_v36 = vpop.f32.mrb[11].mxu0 }
 0x28a   : > { %v1208_v37 = vrot.slane %v1168_v32, 4  ;;  %v1220_v38 = vrot.slane %v1170_v33, 4 }
 0x28b   : > { %v1203_v40 = vmax.f32 %v1167_v29, %v1202_v12  ;;  %v1215_v41 = vmax.f32 %v1169_v1, %v1214_v14 }
 0x28c   : > { %v1209_v44 = vmax.f32 %v1168_v32, %v1208_v37  ;;  %v1221_v45 = vmax.f32 %v1170_v33, %v1220_v38 }
 0x28d   : > { %v1204_v47 = vrot.slane %v1203_v40, 2  ;;  %v1216_v48 = vrot.slane %v1215_v41, 2 }
 0x28e   : > { %v1210_v50 = vrot.slane %v1209_v44, 2  ;;  %v1222_v53 = vrot.slane %v1221_v45, 2 }
 0x28f   : > { %v1205_v55 = vmax.f32 %v1203_v40, %v1204_v47  ;;  %v1217_v56 = vmax.f32 %v1215_v41, %v1216_v48 }
 0x290   : > { %v1211_v58 = vmax.f32 %v1209_v44, %v1210_v50  ;;  %v1223_v59 = vmax.f32 %v1221_v45, %v1222_v53  ;;  %v1270_v53 = vsub.s32 4, %v1813_v39 }
 0x291   : > { %v1206_v62 = vrot.slane %v1205_v55, 1  ;;  %v1218_v63 = vrot.slane %v1217_v56, 1 }
 0x292   : > { %v1212_v0 = vrot.slane %v1211_v58, 1  ;;  %v1224_v3 = vrot.slane %v1223_v59, 1  ;;  %v1271_v2 = vrot.slane %v1858_v46, %v1270_v53 }
 0x293   : > { %v1207_v5 = vmax.f32 %v1205_v55, %v1206_v62  ;;  %v1219_v6 = vmax.f32 %v1217_v56, %v1218_v63  ;;  %v1278_v55 = vsub.s32 6, %v1813_v39 }
 0x294   : > { %v1213_v42 = vmax.f32 %v1211_v58, %v1212_v0  ;;  %v1225_v7 = vmax.f32 %v1223_v59, %v1224_v3  ;;  %v1282_v59 = vsub.s32 7, %v1813_v39 }
 0x295   : > { %v1292_v8 = vadd.f32 %v1255_v60, %v1207_v5  ;;  %v1294_v9 = vadd.f32 %v1263_v61, %v1219_v6 }
 0x296   : > { %v1293_v10 = vadd.f32 %v1259_v57, %v1213_v42  ;;  %v1295_v11 = vadd.f32 %v1267_v4, %v1225_v7  ;;  %v1274_v57 = vsub.s32 5, %v1813_v39  ;;  %v1279_v4 = vrot.slane %v1858_v46, %v1278_v55 }
 0x297   : > { %v1283_v7 = vrot.slane %v1858_v46, %v1282_v59 }
 0x298   : > { %v1308_v13 = vcombine.low %v1292_v8, %v1293_v10  ;;  %v1309_v49 = vcombine.low %v1294_v9, %v1295_v11  ;;  %v1275_v6 = vrot.slane %v1858_v46, %v1274_v57 }
 0x29a   : > { %v1875_v15 = vrot.slane %v1308_v13, %v1872_v43  ;;  %v1878_v16 = vrot.slane %v1309_v49, %v1872_v43 }
 0x29c   : > { %v1340_v17 = vcombine.low %v1875_v15, %v1878_v16 }
 0x29e   : > { %v1083_v20 = vpop.f32.mrb[8].mxu1  ;;  %v1134_v21 = vpop.f32.mrb[12].mxu0  ;;  %v1348_v46 = vrot.slane %v1340_v17, %v1872_v43 }
 0x29f   : > { %v1085_v22 = vpop.f32.mrb[9].mxu1  ;;  %v1136_v23 = vpop.f32.mrb[13].mxu0 }
 0x2a0   : > { %v1087_v24 = vpop.f32.mrb[10].mxu1  ;;  %v1138_v25 = vpop.f32.mrb[14].mxu0 }
 0x2a1   : > { %v1163_v26 = vmax.f32 %v1083_v20, %v1087_v24  ;;  %v1165_v19 = vmax.f32 %v1134_v21, %v1138_v25  ;;  %v1089_v27 = vpop.f32.mrb[11].mxu1  ;;  %v1140_v28 = vpop.f32.mrb[15].mxu0 }
 0x2a2   : > { %v1164_v29 = vmax.f32 %v1085_v22, %v1089_v27  ;;  %v1166_v1 = vmax.f32 %v1136_v23, %v1140_v28 }
 0x2a6   : > { %v1093_v30 = vpop.f32.mrb[12].mxu1  ;;  %v1144_v31 = vpop.f32.mrb[16].mxu0 }
 0x2a7   : > { %v1171_v32 = vmax.f32 %v1163_v26, %v1093_v30  ;;  %v1173_v33 = vmax.f32 %v1165_v19, %v1144_v31  ;;  %v1095_v34 = vpop.f32.mrb[13].mxu1  ;;  %v1146_v35 = vpop.f32.mrb[17].mxu0 }
 0x2a8   : > { %v1172_v12 = vmax.f32 %v1164_v29, %v1095_v34  ;;  %v1174_v14 = vmax.f32 %v1166_v1, %v1146_v35  ;;  %v1097_v18 = vpop.f32.mrb[14].mxu1  ;;  %v1148_v36 = vpop.f32.mrb[18].mxu0 }
 0x2a9   : > { %v1226_v37 = vrot.slane %v1171_v32, 4  ;;  %v1238_v38 = vrot.slane %v1173_v33, 4  ;;  %v1098_v40 = vpop.f32.mrb[15].mxu1  ;;  %v1149_v41 = vpop.f32.mrb[19].mxu0 }
 0x2aa   : > { %v1232_v44 = vrot.slane %v1172_v12, 4  ;;  %v1244_v45 = vrot.slane %v1174_v14, 4 }
 0x2ab   : > { %v1227_v47 = vmax.f32 %v1171_v32, %v1226_v37  ;;  %v1239_v48 = vmax.f32 %v1173_v33, %v1238_v38 }
 0x2ac   : > { %v1233_v50 = vmax.f32 %v1172_v12, %v1232_v44  ;;  %v1245_v51 = vmax.f32 %v1174_v14, %v1244_v45 }
 0x2ad   : > { %v1228_v52 = vrot.slane %v1227_v47, 2  ;;  %v1240_v54 = vrot.slane %v1239_v48, 2 }
 0x2ae   : > { %v1234_v56 = vrot.slane %v1233_v50, 2  ;;  %v1246_v58 = vrot.slane %v1245_v51, 2 }
 0x2af   : > { %v1229_v60 = vmax.f32 %v1227_v47, %v1228_v52  ;;  %v1241_v61 = vmax.f32 %v1239_v48, %v1240_v54 }
 0x2b0   : > { %v1235_v62 = vmax.f32 %v1233_v50, %v1234_v56  ;;  %v1247_v63 = vmax.f32 %v1245_v51, %v1246_v58 }
 0x2b1   : > { %v1230_v0 = vrot.slane %v1229_v60, 1  ;;  %v1242_v3 = vrot.slane %v1241_v61, 1 }
 0x2b2   : > { %v1236_v5 = vrot.slane %v1235_v62, 1  ;;  %v1248_v42 = vrot.slane %v1247_v63, 1 }
 0x2b3   : > { %v1231_v8 = vmax.f32 %v1229_v60, %v1230_v0  ;;  %v1243_v9 = vmax.f32 %v1241_v61, %v1242_v3 }
 0x2b4   : > { %v1237_v39 = vmax.f32 %v1235_v62, %v1236_v5  ;;  %v1249_v10 = vmax.f32 %v1247_v63, %v1248_v42 }
 0x2b5   : > { %v1296_v11 = vadd.f32 %v1271_v2, %v1231_v8  ;;  %v1298_v13 = vadd.f32 %v1279_v4, %v1243_v9 }
 0x2b6   : > { %v1297_v49 = vadd.f32 %v1275_v6, %v1237_v39  ;;  %v1299_v20 = vadd.f32 %v1283_v7, %v1249_v10 }
 0x2b8   : > { %v1310_v21 = vcombine.low %v1296_v11, %v1297_v49  ;;  %v1311_v22 = vcombine.low %v1298_v13, %v1299_v20 }
 0x2ba   : > { %v1332_v23 = vrot.slane %v1310_v21, %v1872_v43  ;;  %v1339_v24 = vrot.slane %v1311_v22, %v1872_v43 }
 0x2bc   : > { %v1341_v25 = vcombine.low %v1332_v23, %v1339_v24 }
 0x2be   : > { %v1355_v26 = vrot.slane %v1341_v25, %v1872_v43 }
 0x2c0   : > { %v1356_v19 = vcombine.low %v1348_v46, %v1355_v26 }
 0x2c2   : > { %1358 = vst [vmem:[%s364_s30] sm:$0xff] %v1356_v19 }
 0x2c3 PF: > { %s18_s26 = sadd.s32 1, %s1675_s26   ;;  %s1926_s24 = smov %s1671_s25 }
 0x2c4   : > { %p15_p4 = scmp.ge.s32.totalorder %s18_s26, 4   ;;  %s1927_s25 = smov %s1929_s28 }
 0x2c6   :  { %17 = sbr.rel (!%p15_p4) target bundleno = 2 (0x2), region = 95 }
 0x2cd   :  { %1387 = vsyncpa [#allocation4], 1 }
 0x2ce   :  { %1389 = vsyncpa [#allocation4 + $0x1], 1 }

</bundles_post_ra>
